<compile_context>
chip_gen: v6e
topology: v6e:2x2x1
jax: 0.10.0
libtpu: 0.0.40
codegen_flags: <defaults>
</compile_context>

<pallas_src>
import math

import jax
import jax.numpy as jnp
from jax.experimental import pallas as pl
from jax.experimental.pallas import tpu as pltpu


def _l1dist_kernel(x1_ref, x2_ref, o_ref):
    # Elementwise hot path on the VPU: |x1 - x2|
    o_ref[...] = jnp.abs(x1_ref[...] - x2_ref[...])


_LANE_CANDIDATES = (4096, 2048, 1024, 512, 256, 128)


def l1_dist(x1, x2, *, target_block_bytes=2 * 1024 * 1024):
    """Elementwise L1 distance |x1 - x2| via a Pallas TPU kernel.

    Accepts any-rank same-shape inputs; returns the same shape/dtype.
    """
    assert x1.shape == x2.shape, "x1 and x2 must have identical shapes"
    assert x1.dtype == x2.dtype, "x1 and x2 must have identical dtypes"

    orig_shape = x1.shape
    dtype = x1.dtype
    itemsize = jnp.dtype(dtype).itemsize
    total = int(math.prod(orig_shape)) if len(orig_shape) > 0 else 1

    # Dtype-aware sublane multiple: 8 rows (f32), 16 (bf16/f16), 32 (int8/fp8).
    sub = max(8, 32 // itemsize)

    # Lane-dense column width: largest multiple-of-128 candidate that divides
    # the flat length and still leaves >= one full sublane tile of rows.
    cols = None
    for c in _LANE_CANDIDATES:
        if total % c == 0 and total // c >= sub:
            cols = c
            break
    if cols is None:
        for c in _LANE_CANDIDATES:
            if total % c == 0:
                cols = c
                break
    if cols is None:
        cols = 128  # flat length not 128-divisible: pad below

    rows = -(-total // cols)  # ceil

    # Block rows: ~target_block_bytes per block (mem-bound; big blocks amortize
    # per-grid-step overhead), rounded to the sublane multiple, never bigger
    # than the (padded) array.
    tile_rows = max(sub, (target_block_bytes // (cols * itemsize)) // sub * sub)
    rows_padded = -(-rows // sub) * sub
    tile_rows = min(tile_rows, rows_padded)
    # Pad rows so the grid tiles evenly — never collapse to one giant block
    # (keeps pipelining alive and keeps blocks shardable across v7x's 2 TCs).
    rows_padded = -(-rows_padded // tile_rows) * tile_rows
    grid = (rows_padded // tile_rows,)

    padded_total = rows_padded * cols
    flat1 = x1.reshape(-1)
    flat2 = x2.reshape(-1)
    if padded_total != total:
        pad = padded_total - total
        flat1 = jnp.pad(flat1, (0, pad))
        flat2 = jnp.pad(flat2, (0, pad))
    x1_2d = flat1.reshape(rows_padded, cols)
    x2_2d = flat2.reshape(rows_padded, cols)

    out_2d = pl.pallas_call(
        _l1dist_kernel,
        out_shape=jax.ShapeDtypeStruct((rows_padded, cols), dtype),
        grid_spec=pltpu.PrefetchScalarGridSpec(
            num_scalar_prefetch=0,
            grid=grid,
            in_specs=[
                pl.BlockSpec((tile_rows, cols), lambda i: (i, 0)),
                pl.BlockSpec((tile_rows, cols), lambda i: (i, 0)),
            ],
            out_specs=pl.BlockSpec((tile_rows, cols), lambda i: (i, 0)),
        ),
        compiler_params=pltpu.CompilerParams(
            dimension_semantics=("parallel",),
        ),
    )(x1_2d, x2_2d)

    out_flat = out_2d.reshape(-1)
    if padded_total != total:
        out_flat = out_flat[:total]
    return out_flat.reshape(orig_shape)


if __name__ == "__main__":
    key = jax.random.PRNGKey(0)
    k1, k2 = jax.random.split(key)

    # Small NCHW inputs consistent with a typical conv-feature pair.
    x1 = jax.random.normal(k1, (2, 4, 16, 16), dtype=jnp.float32)
    x2 = jax.random.normal(k2, (2, 4, 16, 16), dtype=jnp.float32)

    out = l1_dist(x1, x2)
    out = jax.block_until_ready(out)

    # Correctness check against pure-JAX reference.
    ref = jnp.abs(x1 - x2)
    assert out.shape == x1.shape
    assert out.dtype == x1.dtype
    assert jnp.allclose(out, ref, atol=0, rtol=0), "mismatch vs reference"

    print("KERNEL_OK")
</pallas_src>

<mosaic_0001>
module attributes {stable_mosaic.version = 11 : i64} {
  func.func @_l1dist_kernel(%arg0: i32, %arg1: memref<8x256xf32, #tpu.memory_space<vmem>>, %arg2: memref<8x256xf32, #tpu.memory_space<vmem>>, %arg3: memref<8x256xf32, #tpu.memory_space<vmem>>) attributes {dimension_semantics = [#tpu.dimension_semantics<parallel>], iteration_bounds = array<i64: 1>, scalar_prefetch = 0 : i64, scratch_operands = 0 : i64, tpu.core_type = #tpu.core_type<tc>, window_params = [{transform_indices = @transform_0, window_bounds = array<i64: 8, 256>}, {transform_indices = @transform_1, window_bounds = array<i64: 8, 256>}, {transform_indices = @transform_2, window_bounds = array<i64: 8, 256>}]} {
    %c0 = arith.constant 0 : index
    %c0_0 = arith.constant 0 : index
    %0 = vector.load %arg1[%c0, %c0_0] : memref<8x256xf32, #tpu.memory_space<vmem>>, vector<8x256xf32>
    %c0_1 = arith.constant 0 : index
    %c0_2 = arith.constant 0 : index
    %1 = vector.load %arg2[%c0_1, %c0_2] : memref<8x256xf32, #tpu.memory_space<vmem>>, vector<8x256xf32>
    %2 = arith.subf %0, %1 : vector<8x256xf32>
    %3 = math.absf %2 : vector<8x256xf32>
    %c0_3 = arith.constant 0 : index
    %c0_4 = arith.constant 0 : index
    %4 = vector.load %arg3[%c0_3, %c0_4] : memref<8x256xf32, #tpu.memory_space<vmem>>, vector<8x256xf32>
    tpu.vector_store %arg3[%c0_3, %c0_4], %3 {strides = array<i32>} : memref<8x256xf32, #tpu.memory_space<vmem>>, vector<8x256xf32>,
    return
  }
  func.func @transform_0(%arg0: i32) -> (i32, i32) {
    %c0_i32 = arith.constant 0 : i32
    %c0_i32_0 = arith.constant 0 : i32
    return %arg0, %c0_i32 : i32, i32
  }
  func.func @transform_1(%arg0: i32) -> (i32, i32) {
    %c0_i32 = arith.constant 0 : i32
    %c0_i32_0 = arith.constant 0 : i32
    return %arg0, %c0_i32 : i32, i32
  }
  func.func @transform_2(%arg0: i32) -> (i32, i32) {
    %c0_i32 = arith.constant 0 : i32
    %c0_i32_0 = arith.constant 0 : i32
    return %arg0, %c0_i32 : i32, i32
  }
}

</mosaic_0001>

<bundles_post_ra>
// kernel: tpu_custom_call.1
= control target key start
LH: loop header
LB: loop body
LE: loop exit
PB: predicated region body
PF: predicated region fallthrough
CT: control target
= control target key end

     0   :  { %7 = vsyncpa [#allocation3], 0  ;;  %s158_s0 = inlined_call_operand.hbm [shape: f32[8,256], index: 0, kind: input, shape index: {}]   ;;  %s159_s1 = inlined_call_operand.hbm [shape: f32[8,256], index: 1, kind: input, shape index: {}]   ;;  %s160_s2 = inlined_call_operand.hbm [shape: f32[8,256], index: 2, kind: output, shape index: {}]  }
   0x1   :  { %8 = vsyncpa [#allocation6], 0 }
   0x2   :  { %9 = vsyncpa [#allocation4], 0  ;;  %s131_s9 = smov [#allocation2]   ;;  %s132_s11 = smov [#allocation5]  }
   0x3   :  { %s16_s10 = sshll.u32 %s131_s9, 4  ;;  %s26_s12 = sshll.u32 %s132_s11, 4  ;;  %s17_s10 = int_to_ptr.vmem [resolvable:$true] %s16_s10  ;;  %s27_s12 = int_to_ptr.vmem [resolvable:$true] %s26_s12 }
   0x4   :  { %s73_s13 = scalar_lea.vmem %s17_s10, 256  ;;  %p78_p1 = scmp.lt.s32.totalorder %s17_s10, %s17_s10 }
   0x5   :  { %p74_p0 = scmp.ne.s32.totalorder %s17_s10, %s73_s13  ;;  %p79_p2 = scmp.lt.s32.totalorder %s73_s13, %s73_s13 }
   0x7   :  { %p80_p3 = por %p79_p2, %p78_p1 }
   0x9   :  { %p81_p4 = pnand %p80_p3, %p74_p0 }
   0xb   :  { %84 = shalt.err (!%p81_p4)
}
   0xc   :  { %19 = dma.hbm_to_vmem [thread:$0]  %s158_s0, 256, %s17_s10, [#allocation3]  }
   0xd   :  { %s93_s16 = scalar_lea.vmem %s27_s12, 256  ;;  %p98_p6 = scmp.lt.s32.totalorder %s27_s12, %s27_s12 }
   0xe   :  { %p94_p5 = scmp.ne.s32.totalorder %s27_s12, %s93_s16  ;;  %p99_p7 = scmp.lt.s32.totalorder %s93_s16, %s93_s16 }
  0x10   :  { %p100_p8 = por %p99_p7, %p98_p6 }
  0x12   :  { %p101_p9 = pnand %p100_p8, %p94_p5 }
  0x14   :  { %104 = shalt.err (!%p101_p9)
}
  0x15   :  { %29 = dma.hbm_to_vmem [thread:$0]  %s159_s1, 256, %s27_s12, [#allocation6]  }
  0x16   :  { %125 = dma.done.wait [#allocation3], 256  }
  0x17   :  { %126 = vsyncadd [#allocation3], 4294967040 }
  0x18   :  { %127 = dma.done.wait [#allocation6], 256  }
  0x19   :  { %128 = vsyncadd [#allocation6], 4294967040  ;;  %v36_v0 = vld [vmem:[#allocation2] sm:$0xff]  ;;  %v38_v1 = vld [vmem:[#allocation5] sm:$0xff]  ;;  %s133_s0 = smov [#allocation7]  }
  0x1a   :  { %v37_v2 = vld [vmem:[#allocation2 + $0x8] sm:$0xff]  ;;  %v40_v3 = vsub.f32 %v36_v0, %v38_v1  ;;  %v39_v4 = vld [vmem:[#allocation5 + $0x8] sm:$0xff]  ;;  %s52_s19 = sshll.u32 %s133_s0, 4  ;;  %s53_s19 = int_to_ptr.vmem [resolvable:$true] %s52_s19 }
  0x1b   :  { %v41_v5 = vsub.f32 %v37_v2, %v39_v4  ;;  %s105_s20 = scalar_lea.vmem %s53_s19, 256  ;;  %p110_p11 = scmp.lt.s32.totalorder %s53_s19, %s53_s19 }
  0x1c   :  { %v42_v6 = vand.u32 2147483647, %v40_v3  ;;  %p106_p10 = scmp.ne.s32.totalorder %s53_s19, %s105_s20  ;;  %p111_p12 = scmp.lt.s32.totalorder %s105_s20, %s105_s20 }
  0x1d   :  { %v43_v7 = vand.u32 2147483647, %v41_v5 }
  0x1e   :  { %44 = vst [vmem:[#allocation7] sm:$0xff] %v42_v6  ;;  %p112_p13 = por %p111_p12, %p110_p11 }
  0x1f   :  { %45 = vst [vmem:[#allocation7 + $0x8] sm:$0xff] %v43_v7 }
  0x20   :  { %p113_p0 = pnand %p112_p13, %p106_p10 }
  0x22   :  { %116 = shalt.err (!%p113_p0)
}
  0x23   :  { %55 = dma.vmem_to_hbm [thread:$0]  %s53_s19, 256, %s160_s2, [#allocation4]  }
  0x24   :  { %129 = dma.done.wait [#allocation4], 256  }
  0x25   :  { %130 = vsyncadd [#allocation4], 4294967040 }
  0x26   :  { %59 = vsyncpa [#allocation3], 1 }
  0x27   :  { %60 = vsyncpa [#allocation6], 1 }
  0x28   :  { %61 = vsyncpa [#allocation4], 1 }

</bundles_post_ra>
